<compile_context>
chip_gen: v7x
topology: tpu7x:2x2x1
jax: 0.10.0
libtpu: 0.0.40
codegen_flags: <defaults>
</compile_context>

<pallas_src>
import functools

import jax
import jax.numpy as jnp
from jax import lax
from jax.experimental import pallas as pl
from jax.experimental.pallas import tpu as pltpu

LANE = 128  # all feature axes are padded to full 128-lane vregs


def _round_up(x, m):
    return ((x + m - 1) // m) * m


# ----------------------------- Pallas kernel ------------------------------

def cascade_kernel(ids_ref, mask_ref, tbl_ref, wp_ref, bp_ref,
                   whead_ref, bhead_ref, w2b_ref, out_ref, *, num_level1):
    ids = ids_ref[...]                                     # [TB, S] int32
    mask = mask_ref[...]                                   # [TB, S] f32

    tb, seq = ids.shape
    vp = tbl_ref.shape[0]

    # Masked-mean weights: one divide per row instead of per element.
    denom = jnp.maximum(jnp.sum(mask, axis=1, keepdims=True), 1.0)   # [TB, 1]
    w = mask * (1.0 / denom)                               # [TB, S]
    # (production: pl.reciprocal(denom, approx=True) on the EUP)

    # Fused gather + masked mean: weighted one-hot histogram over the vocab,
    # then a single MXU contraction with the VMEM-resident embedding table.
    iota_v = lax.broadcasted_iota(jnp.int32, (tb, vp), 1)  # [TB, VP]
    a = jnp.zeros((tb, vp), jnp.float32)
    for s in range(seq):                                   # static unroll, tiny S
        a = a + jnp.where(ids[:, s:s + 1] == iota_v, w[:, s:s + 1], 0.0)
    mean = jnp.dot(a, tbl_ref[...],
                   preferred_element_type=jnp.float32)     # [TB, HP]

    # BERT pooler: tanh(mean @ Wp + bp)  -> pooled_output == outputs[1]
    pooled = jnp.tanh(
        jnp.dot(mean, wp_ref[...], preferred_element_type=jnp.float32)
        + bp_ref[...])                                     # [TB, HP]

    # dropout(p=0.1) is identity at inference time.

    # Combined head: [level1_logits | pooled@W2a + b2 | 0...] in one matmul.
    head = (jnp.dot(pooled, whead_ref[...], preferred_element_type=jnp.float32)
            + bhead_ref[...])                              # [TB, 128]

    # Masked softmax over the first num_level1 lanes (level1_labels=None path).
    lane = lax.broadcasted_iota(jnp.int32, head.shape, 1)
    logits = jnp.where(lane < num_level1, head, -1e30)
    m = jnp.max(logits, axis=-1, keepdims=True)
    e = jnp.exp(logits - m)
    probs = e * (1.0 / jnp.sum(e, axis=-1, keepdims=True))  # zeros outside L1

    # leaf_logits = concat([pooled, probs]) @ W2 + b2
    #             = head[:, L1:L1+LEAF] + probs @ W2b (padded [128,128]).
    # One lane-dense [TB, 128] store carries both level1 and leaf logits.
    out_ref[...] = head + jnp.dot(probs, w2b_ref[...],
                                  preferred_element_type=jnp.float32)


# --------------------------- parameter packing -----------------------------

def pack_params(params):
    """Zero-pad / fuse the unpadded params into 128-lane-aligned kernel operands."""
    vocab, hidden = params["embedding"].shape
    num_level1 = params["w1"].shape[1]
    num_leaf = params["w2b"].shape[1]
    hp = _round_up(hidden, LANE)
    vp = _round_up(vocab, LANE)
    outp = _round_up(num_level1 + num_leaf, LANE)
    f32 = jnp.float32

    tbl = jnp.zeros((vp, hp), f32).at[:vocab, :hidden].set(params["embedding"])
    wp = jnp.zeros((hp, hp), f32).at[:hidden, :hidden].set(params["wp"])
    bp = jnp.zeros((1, hp), f32).at[:, :hidden].set(params["bp"])
    whead = (jnp.zeros((hp, outp), f32)
             .at[:hidden, :num_level1].set(params["w1"])
             .at[:hidden, num_level1:num_level1 + num_leaf].set(params["w2a"]))
    bhead = (jnp.zeros((1, outp), f32)
             .at[:, :num_level1].set(params["b1"])
             .at[:, num_level1:num_level1 + num_leaf].set(params["b2"]))
    w2b = (jnp.zeros((outp, outp), f32)
           .at[:num_level1, num_level1:num_level1 + num_leaf]
           .set(params["w2b"]))
    return dict(tbl=tbl, wp=wp, bp=bp, whead=whead, bhead=bhead, w2b=w2b,
                dims=(hp, vp, outp, num_level1, num_leaf))


# ------------------------------ wrapper ------------------------------------

def cascade_bert_classifier(input_ids, attention_mask, params, *, batch_tile=8):
    """Forward pass. Returns (level1_logits, leaf_logits)."""
    packed = pack_params(params)
    hp, vp, outp, num_level1, num_leaf = packed["dims"]
    B, S = input_ids.shape
    assert B % batch_tile == 0, "batch must be a multiple of batch_tile"

    kernel = functools.partial(cascade_kernel, num_level1=num_level1)

    out = pl.pallas_call(
        kernel,
        out_shape=jax.ShapeDtypeStruct((B, outp), jnp.float32),
        grid=(B // batch_tile,),
        in_specs=[
            pl.BlockSpec((batch_tile, S), lambda i: (i, 0)),   # input_ids
            pl.BlockSpec((batch_tile, S), lambda i: (i, 0)),   # attention_mask
            pl.BlockSpec((vp, hp), lambda i: (0, 0)),          # embedding table
            pl.BlockSpec((hp, hp), lambda i: (0, 0)),          # Wp (pooler)
            pl.BlockSpec((1, hp), lambda i: (0, 0)),           # bp
            pl.BlockSpec((hp, outp), lambda i: (0, 0)),        # [W1 | W2a]
            pl.BlockSpec((1, outp), lambda i: (0, 0)),         # [b1 | b2]
            pl.BlockSpec((outp, outp), lambda i: (0, 0)),      # W2b (padded)
        ],
        out_specs=pl.BlockSpec((batch_tile, outp), lambda i: (i, 0)),
        compiler_params=pltpu.CompilerParams(
            dimension_semantics=("parallel",)),
    )(input_ids.astype(jnp.int32), attention_mask.astype(jnp.float32),
      packed["tbl"], packed["wp"], packed["bp"],
      packed["whead"], packed["bhead"], packed["w2b"])

    level1_logits = out[:, :num_level1]
    leaf_logits = out[:, num_level1:num_level1 + num_leaf]
    return level1_logits, leaf_logits


# ------------------------- deterministic params ---------------------------

def init_params(key, vocab, hidden, num_level1, num_leaf):
    ks = jax.random.split(key, 6)
    scale = 0.02
    embedding = scale * jax.random.normal(ks[0], (vocab, hidden), jnp.float32)
    wp = scale * jax.random.normal(ks[1], (hidden, hidden), jnp.float32)
    bp = jnp.zeros((1, hidden), jnp.float32)
    w1 = scale * jax.random.normal(ks[2], (hidden, num_level1), jnp.float32)
    b1 = scale * jax.random.normal(ks[3], (1, num_level1), jnp.float32)
    # leaf classifier weight [hidden + num_level1, num_leaf], split along input
    w2 = scale * jax.random.normal(ks[4], (hidden + num_level1, num_leaf),
                                   jnp.float32)
    b2 = scale * jax.random.normal(ks[5], (1, num_leaf), jnp.float32)
    return {
        "embedding": embedding,
        "wp": wp, "bp": bp,
        "w1": w1, "b1": b1,
        "w2a": w2[:hidden, :], "w2b": w2[hidden:, :], "b2": b2,
    }


# ----------------------------- reference ----------------------------------

def reference_forward(input_ids, attention_mask, params):
    emb = jnp.take(params["embedding"], input_ids, axis=0).astype(jnp.float32)
    mask = attention_mask.astype(jnp.float32)
    denom = jnp.maximum(jnp.sum(mask, axis=1, keepdims=True), 1.0)
    mean = jnp.sum(emb * mask[:, :, None], axis=1) / denom
    pooled = jnp.tanh(mean @ params["wp"] + params["bp"])
    l1 = pooled @ params["w1"] + params["b1"]
    probs = jax.nn.softmax(l1, axis=-1)
    leaf_in = jnp.concatenate([pooled, probs], axis=-1)
    w2 = jnp.concatenate([params["w2a"], params["w2b"]], axis=0)
    leaf = leaf_in @ w2 + params["b2"]
    return l1, leaf


# ------------------------------- main --------------------------------------

if __name__ == "__main__":
    B, S, H = 16, 16, 32
    VOCAB, NUM_LEVEL1, NUM_LEAF = 64, 8, 16

    key = jax.random.PRNGKey(0)
    k_ids, k_params = jax.random.split(key)

    input_ids = jax.random.randint(k_ids, (B, S), 0, VOCAB, dtype=jnp.int32)
    attention_mask = jnp.ones((B, S), jnp.int32)
    # pad out the tail of a few sequences to exercise the mask
    attention_mask = attention_mask.at[1, 12:].set(0)
    attention_mask = attention_mask.at[5, 8:].set(0)
    attention_mask = attention_mask.at[13, 4:].set(0)

    params = init_params(k_params, VOCAB, H, NUM_LEVEL1, NUM_LEAF)

    l1_logits, leaf_logits = cascade_bert_classifier(
        input_ids, attention_mask, params, batch_tile=8)
    jax.block_until_ready((l1_logits, leaf_logits))

    ref_l1, ref_leaf = reference_forward(input_ids, attention_mask, params)
    assert l1_logits.shape == (B, NUM_LEVEL1)
    assert leaf_logits.shape == (B, NUM_LEAF)
    assert jnp.allclose(l1_logits, ref_l1, rtol=1e-4, atol=1e-4)
    assert jnp.allclose(leaf_logits, ref_leaf, rtol=1e-4, atol=1e-4)

    print("KERNEL_OK")
</pallas_src>

<mosaic_0001>
module attributes {stable_mosaic.version = 11 : i64} {
  func.func @cascade_kernel(%arg0: i32, %arg1: memref<8x16xi32, #tpu.memory_space<vmem>>, %arg2: memref<8x16xf32, #tpu.memory_space<vmem>>, %arg3: memref<128x128xf32, #tpu.memory_space<vmem>>, %arg4: memref<128x128xf32, #tpu.memory_space<vmem>>, %arg5: memref<1x128xf32, #tpu.memory_space<vmem>>, %arg6: memref<128x128xf32, #tpu.memory_space<vmem>>, %arg7: memref<1x128xf32, #tpu.memory_space<vmem>>, %arg8: memref<128x128xf32, #tpu.memory_space<vmem>>, %arg9: memref<8x128xf32, #tpu.memory_space<vmem>>) attributes {dimension_semantics = [#tpu.dimension_semantics<parallel>], iteration_bounds = array<i64: 2>, scalar_prefetch = 0 : i64, scratch_operands = 0 : i64, tpu.core_type = #tpu.core_type<tc>, window_params = [{transform_indices = @transform_0, window_bounds = array<i64: 8, 16>}, {transform_indices = @transform_1, window_bounds = array<i64: 8, 16>}, {pipeline_mode = #tpu.pipeline_mode<synchronous>, transform_indices = @transform_2, window_bounds = array<i64: 128, 128>}, {pipeline_mode = #tpu.pipeline_mode<synchronous>, transform_indices = @transform_3, window_bounds = array<i64: 128, 128>}, {pipeline_mode = #tpu.pipeline_mode<synchronous>, transform_indices = @transform_4, window_bounds = array<i64: 1, 128>}, {pipeline_mode = #tpu.pipeline_mode<synchronous>, transform_indices = @transform_5, window_bounds = array<i64: 128, 128>}, {pipeline_mode = #tpu.pipeline_mode<synchronous>, transform_indices = @transform_6, window_bounds = array<i64: 1, 128>}, {pipeline_mode = #tpu.pipeline_mode<synchronous>, transform_indices = @transform_7, window_bounds = array<i64: 128, 128>}, {transform_indices = @transform_8, window_bounds = array<i64: 8, 128>}]} {
    %c0 = arith.constant 0 : index
    %c0_0 = arith.constant 0 : index
    %0 = vector.load %arg1[%c0, %c0_0] : memref<8x16xi32, #tpu.memory_space<vmem>>, vector<8x16xi32>
    %c0_1 = arith.constant 0 : index
    %c0_2 = arith.constant 0 : index
    %1 = vector.load %arg2[%c0_1, %c0_2] : memref<8x16xf32, #tpu.memory_space<vmem>>, vector<8x16xf32>
    %cst = arith.constant dense<0.000000e+00> : vector<8xf32>
    %2 = vector.multi_reduction <add>, %1, %cst [1] : vector<8x16xf32> to vector<8xf32>
    %3 = vector.shape_cast %2 : vector<8xf32> to vector<8x1xf32>
    %cst_3 = arith.constant 1.000000e+00 : f32
    %4 = vector.broadcast %cst_3 : f32 to vector<8x1xf32>
    %5 = arith.maximumf %3, %4 : vector<8x1xf32>
    %cst_4 = arith.constant 1.000000e+00 : f32
    %6 = vector.broadcast %cst_4 : f32 to vector<8x1xf32>
    %7 = arith.divf %6, %5 : vector<8x1xf32>
    %8 = vector.broadcast %7 : vector<8x1xf32> to vector<8x16xf32>
    %9 = arith.mulf %1, %8 : vector<8x16xf32>
    %10 = tpu.iota {dimensions = array<i32: 1>} : vector<8x128xi32>
    %cst_5 = arith.constant 0.000000e+00 : f32
    %11 = vector.broadcast %cst_5 : f32 to vector<8x128xf32>
    %12 = vector.extract_strided_slice %0 {offsets = [0, 0], sizes = [8, 1], strides = [1, 1]} : vector<8x16xi32> to vector<8x1xi32>
    %13 = vector.broadcast %12 : vector<8x1xi32> to vector<8x128xi32>
    %14 = arith.cmpi eq, %13, %10 : vector<8x128xi32>
    %15 = vector.extract_strided_slice %9 {offsets = [0, 0], sizes = [8, 1], strides = [1, 1]} : vector<8x16xf32> to vector<8x1xf32>
    %cst_6 = arith.constant 0.000000e+00 : f32
    %16 = vector.shape_cast %15 : vector<8x1xf32> to vector<8x1xf32>
    %17 = vector.broadcast %16 : vector<8x1xf32> to vector<8x128xf32>
    %18 = vector.broadcast %cst_6 : f32 to vector<8x128xf32>
    %19 = arith.select %14, %17, %18 : vector<8x128xi1>, vector<8x128xf32>
    %20 = arith.addf %11, %19 : vector<8x128xf32>
    %21 = vector.extract_strided_slice %0 {offsets = [0, 1], sizes = [8, 1], strides = [1, 1]} : vector<8x16xi32> to vector<8x1xi32>
    %22 = vector.broadcast %21 : vector<8x1xi32> to vector<8x128xi32>
    %23 = arith.cmpi eq, %22, %10 : vector<8x128xi32>
    %24 = vector.extract_strided_slice %9 {offsets = [0, 1], sizes = [8, 1], strides = [1, 1]} : vector<8x16xf32> to vector<8x1xf32>
    %cst_7 = arith.constant 0.000000e+00 : f32
    %25 = vector.shape_cast %24 : vector<8x1xf32> to vector<8x1xf32>
    %26 = vector.broadcast %25 : vector<8x1xf32> to vector<8x128xf32>
    %27 = vector.broadcast %cst_7 : f32 to vector<8x128xf32>
    %28 = arith.select %23, %26, %27 : vector<8x128xi1>, vector<8x128xf32>
    %29 = arith.addf %20, %28 : vector<8x128xf32>
    %30 = vector.extract_strided_slice %0 {offsets = [0, 2], sizes = [8, 1], strides = [1, 1]} : vector<8x16xi32> to vector<8x1xi32>
    %31 = vector.broadcast %30 : vector<8x1xi32> to vector<8x128xi32>
    %32 = arith.cmpi eq, %31, %10 : vector<8x128xi32>
    %33 = vector.extract_strided_slice %9 {offsets = [0, 2], sizes = [8, 1], strides = [1, 1]} : vector<8x16xf32> to vector<8x1xf32>
    %cst_8 = arith.constant 0.000000e+00 : f32
    %34 = vector.shape_cast %33 : vector<8x1xf32> to vector<8x1xf32>
    %35 = vector.broadcast %34 : vector<8x1xf32> to vector<8x128xf32>
    %36 = vector.broadcast %cst_8 : f32 to vector<8x128xf32>
    %37 = arith.select %32, %35, %36 : vector<8x128xi1>, vector<8x128xf32>
    %38 = arith.addf %29, %37 : vector<8x128xf32>
    %39 = vector.extract_strided_slice %0 {offsets = [0, 3], sizes = [8, 1], strides = [1, 1]} : vector<8x16xi32> to vector<8x1xi32>
    %40 = vector.broadcast %39 : vector<8x1xi32> to vector<8x128xi32>
    %41 = arith.cmpi eq, %40, %10 : vector<8x128xi32>
    %42 = vector.extract_strided_slice %9 {offsets = [0, 3], sizes = [8, 1], strides = [1, 1]} : vector<8x16xf32> to vector<8x1xf32>
    %cst_9 = arith.constant 0.000000e+00 : f32
    %43 = vector.shape_cast %42 : vector<8x1xf32> to vector<8x1xf32>
    %44 = vector.broadcast %43 : vector<8x1xf32> to vector<8x128xf32>
    %45 = vector.broadcast %cst_9 : f32 to vector<8x128xf32>
    %46 = arith.select %41, %44, %45 : vector<8x128xi1>, vector<8x128xf32>
    %47 = arith.addf %38, %46 : vector<8x128xf32>
    %48 = vector.extract_strided_slice %0 {offsets = [0, 4], sizes = [8, 1], strides = [1, 1]} : vector<8x16xi32> to vector<8x1xi32>
    %49 = vector.broadcast %48 : vector<8x1xi32> to vector<8x128xi32>
    %50 = arith.cmpi eq, %49, %10 : vector<8x128xi32>
    %51 = vector.extract_strided_slice %9 {offsets = [0, 4], sizes = [8, 1], strides = [1, 1]} : vector<8x16xf32> to vector<8x1xf32>
    %cst_10 = arith.constant 0.000000e+00 : f32
    %52 = vector.shape_cast %51 : vector<8x1xf32> to vector<8x1xf32>
    %53 = vector.broadcast %52 : vector<8x1xf32> to vector<8x128xf32>
    %54 = vector.broadcast %cst_10 : f32 to vector<8x128xf32>
    %55 = arith.select %50, %53, %54 : vector<8x128xi1>, vector<8x128xf32>
    %56 = arith.addf %47, %55 : vector<8x128xf32>
    %57 = vector.extract_strided_slice %0 {offsets = [0, 5], sizes = [8, 1], strides = [1, 1]} : vector<8x16xi32> to vector<8x1xi32>
    %58 = vector.broadcast %57 : vector<8x1xi32> to vector<8x128xi32>
    %59 = arith.cmpi eq, %58, %10 : vector<8x128xi32>
    %60 = vector.extract_strided_slice %9 {offsets = [0, 5], sizes = [8, 1], strides = [1, 1]} : vector<8x16xf32> to vector<8x1xf32>
    %cst_11 = arith.constant 0.000000e+00 : f32
    %61 = vector.shape_cast %60 : vector<8x1xf32> to vector<8x1xf32>
    %62 = vector.broadcast %61 : vector<8x1xf32> to vector<8x128xf32>
    %63 = vector.broadcast %cst_11 : f32 to vector<8x128xf32>
    %64 = arith.select %59, %62, %63 : vector<8x128xi1>, vector<8x128xf32>
    %65 = arith.addf %56, %64 : vector<8x128xf32>
    %66 = vector.extract_strided_slice %0 {offsets = [0, 6], sizes = [8, 1], strides = [1, 1]} : vector<8x16xi32> to vector<8x1xi32>
    %67 = vector.broadcast %66 : vector<8x1xi32> to vector<8x128xi32>
    %68 = arith.cmpi eq, %67, %10 : vector<8x128xi32>
    %69 = vector.extract_strided_slice %9 {offsets = [0, 6], sizes = [8, 1], strides = [1, 1]} : vector<8x16xf32> to vector<8x1xf32>
    %cst_12 = arith.constant 0.000000e+00 : f32
    %70 = vector.shape_cast %69 : vector<8x1xf32> to vector<8x1xf32>
    %71 = vector.broadcast %70 : vector<8x1xf32> to vector<8x128xf32>
    %72 = vector.broadcast %cst_12 : f32 to vector<8x128xf32>
    %73 = arith.select %68, %71, %72 : vector<8x128xi1>, vector<8x128xf32>
    %74 = arith.addf %65, %73 : vector<8x128xf32>
    %75 = vector.extract_strided_slice %0 {offsets = [0, 7], sizes = [8, 1], strides = [1, 1]} : vector<8x16xi32> to vector<8x1xi32>
    %76 = vector.broadcast %75 : vector<8x1xi32> to vector<8x128xi32>
    %77 = arith.cmpi eq, %76, %10 : vector<8x128xi32>
    %78 = vector.extract_strided_slice %9 {offsets = [0, 7], sizes = [8, 1], strides = [1, 1]} : vector<8x16xf32> to vector<8x1xf32>
    %cst_13 = arith.constant 0.000000e+00 : f32
    %79 = vector.shape_cast %78 : vector<8x1xf32> to vector<8x1xf32>
    %80 = vector.broadcast %79 : vector<8x1xf32> to vector<8x128xf32>
    %81 = vector.broadcast %cst_13 : f32 to vector<8x128xf32>
    %82 = arith.select %77, %80, %81 : vector<8x128xi1>, vector<8x128xf32>
    %83 = arith.addf %74, %82 : vector<8x128xf32>
    %84 = vector.extract_strided_slice %0 {offsets = [0, 8], sizes = [8, 1], strides = [1, 1]} : vector<8x16xi32> to vector<8x1xi32>
    %85 = vector.broadcast %84 : vector<8x1xi32> to vector<8x128xi32>
    %86 = arith.cmpi eq, %85, %10 : vector<8x128xi32>
    %87 = vector.extract_strided_slice %9 {offsets = [0, 8], sizes = [8, 1], strides = [1, 1]} : vector<8x16xf32> to vector<8x1xf32>
    %cst_14 = arith.constant 0.000000e+00 : f32
    %88 = vector.shape_cast %87 : vector<8x1xf32> to vector<8x1xf32>
    %89 = vector.broadcast %88 : vector<8x1xf32> to vector<8x128xf32>
    %90 = vector.broadcast %cst_14 : f32 to vector<8x128xf32>
    %91 = arith.select %86, %89, %90 : vector<8x128xi1>, vector<8x128xf32>
    %92 = arith.addf %83, %91 : vector<8x128xf32>
    %93 = vector.extract_strided_slice %0 {offsets = [0, 9], sizes = [8, 1], strides = [1, 1]} : vector<8x16xi32> to vector<8x1xi32>
    %94 = vector.broadcast %93 : vector<8x1xi32> to vector<8x128xi32>
    %95 = arith.cmpi eq, %94, %10 : vector<8x128xi32>
    %96 = vector.extract_strided_slice %9 {offsets = [0, 9], sizes = [8, 1], strides = [1, 1]} : vector<8x16xf32> to vector<8x1xf32>
    %cst_15 = arith.constant 0.000000e+00 : f32
    %97 = vector.shape_cast %96 : vector<8x1xf32> to vector<8x1xf32>
    %98 = vector.broadcast %97 : vector<8x1xf32> to vector<8x128xf32>
    %99 = vector.broadcast %cst_15 : f32 to vector<8x128xf32>
    %100 = arith.select %95, %98, %99 : vector<8x128xi1>, vector<8x128xf32>
    %101 = arith.addf %92, %100 : vector<8x128xf32>
    %102 = vector.extract_strided_slice %0 {offsets = [0, 10], sizes = [8, 1], strides = [1, 1]} : vector<8x16xi32> to vector<8x1xi32>
    %103 = vector.broadcast %102 : vector<8x1xi32> to vector<8x128xi32>
    %104 = arith.cmpi eq, %103, %10 : vector<8x128xi32>
    %105 = vector.extract_strided_slice %9 {offsets = [0, 10], sizes = [8, 1], strides = [1, 1]} : vector<8x16xf32> to vector<8x1xf32>
    %cst_16 = arith.constant 0.000000e+00 : f32
    %106 = vector.shape_cast %105 : vector<8x1xf32> to vector<8x1xf32>
    %107 = vector.broadcast %106 : vector<8x1xf32> to vector<8x128xf32>
    %108 = vector.broadcast %cst_16 : f32 to vector<8x128xf32>
    %109 = arith.select %104, %107, %108 : vector<8x128xi1>, vector<8x128xf32>
    %110 = arith.addf %101, %109 : vector<8x128xf32>
    %111 = vector.extract_strided_slice %0 {offsets = [0, 11], sizes = [8, 1], strides = [1, 1]} : vector<8x16xi32> to vector<8x1xi32>
    %112 = vector.broadcast %111 : vector<8x1xi32> to vector<8x128xi32>
    %113 = arith.cmpi eq, %112, %10 : vector<8x128xi32>
    %114 = vector.extract_strided_slice %9 {offsets = [0, 11], sizes = [8, 1], strides = [1, 1]} : vector<8x16xf32> to vector<8x1xf32>
    %cst_17 = arith.constant 0.000000e+00 : f32
    %115 = vector.shape_cast %114 : vector<8x1xf32> to vector<8x1xf32>
    %116 = vector.broadcast %115 : vector<8x1xf32> to vector<8x128xf32>
    %117 = vector.broadcast %cst_17 : f32 to vector<8x128xf32>
    %118 = arith.select %113, %116, %117 : vector<8x128xi1>, vector<8x128xf32>
    %119 = arith.addf %110, %118 : vector<8x128xf32>
    %120 = vector.extract_strided_slice %0 {offsets = [0, 12], sizes = [8, 1], strides = [1, 1]} : vector<8x16xi32> to vector<8x1xi32>
    %121 = vector.broadcast %120 : vector<8x1xi32> to vector<8x128xi32>
    %122 = arith.cmpi eq, %121, %10 : vector<8x128xi32>
    %123 = vector.extract_strided_slice %9 {offsets = [0, 12], sizes = [8, 1], strides = [1, 1]} : vector<8x16xf32> to vector<8x1xf32>
    %cst_18 = arith.constant 0.000000e+00 : f32
    %124 = vector.shape_cast %123 : vector<8x1xf32> to vector<8x1xf32>
    %125 = vector.broadcast %124 : vector<8x1xf32> to vector<8x128xf32>
    %126 = vector.broadcast %cst_18 : f32 to vector<8x128xf32>
    %127 = arith.select %122, %125, %126 : vector<8x128xi1>, vector<8x128xf32>
    %128 = arith.addf %119, %127 : vector<8x128xf32>
    %129 = vector.extract_strided_slice %0 {offsets = [0, 13], sizes = [8, 1], strides = [1, 1]} : vector<8x16xi32> to vector<8x1xi32>
    %130 = vector.broadcast %129 : vector<8x1xi32> to vector<8x128xi32>
    %131 = arith.cmpi eq, %130, %10 : vector<8x128xi32>
    %132 = vector.extract_strided_slice %9 {offsets = [0, 13], sizes = [8, 1], strides = [1, 1]} : vector<8x16xf32> to vector<8x1xf32>
    %cst_19 = arith.constant 0.000000e+00 : f32
    %133 = vector.shape_cast %132 : vector<8x1xf32> to vector<8x1xf32>
    %134 = vector.broadcast %133 : vector<8x1xf32> to vector<8x128xf32>
    %135 = vector.broadcast %cst_19 : f32 to vector<8x128xf32>
    %136 = arith.select %131, %134, %135 : vector<8x128xi1>, vector<8x128xf32>
    %137 = arith.addf %128, %136 : vector<8x128xf32>
    %138 = vector.extract_strided_slice %0 {offsets = [0, 14], sizes = [8, 1], strides = [1, 1]} : vector<8x16xi32> to vector<8x1xi32>
    %139 = vector.broadcast %138 : vector<8x1xi32> to vector<8x128xi32>
    %140 = arith.cmpi eq, %139, %10 : vector<8x128xi32>
    %141 = vector.extract_strided_slice %9 {offsets = [0, 14], sizes = [8, 1], strides = [1, 1]} : vector<8x16xf32> to vector<8x1xf32>
    %cst_20 = arith.constant 0.000000e+00 : f32
    %142 = vector.shape_cast %141 : vector<8x1xf32> to vector<8x1xf32>
    %143 = vector.broadcast %142 : vector<8x1xf32> to vector<8x128xf32>
    %144 = vector.broadcast %cst_20 : f32 to vector<8x128xf32>
    %145 = arith.select %140, %143, %144 : vector<8x128xi1>, vector<8x128xf32>
    %146 = arith.addf %137, %145 : vector<8x128xf32>
    %147 = vector.extract_strided_slice %0 {offsets = [0, 15], sizes = [8, 1], strides = [1, 1]} : vector<8x16xi32> to vector<8x1xi32>
    %148 = vector.broadcast %147 : vector<8x1xi32> to vector<8x128xi32>
    %149 = arith.cmpi eq, %148, %10 : vector<8x128xi32>
    %150 = vector.extract_strided_slice %9 {offsets = [0, 15], sizes = [8, 1], strides = [1, 1]} : vector<8x16xf32> to vector<8x1xf32>
    %cst_21 = arith.constant 0.000000e+00 : f32
    %151 = vector.shape_cast %150 : vector<8x1xf32> to vector<8x1xf32>
    %152 = vector.broadcast %151 : vector<8x1xf32> to vector<8x128xf32>
    %153 = vector.broadcast %cst_21 : f32 to vector<8x128xf32>
    %154 = arith.select %149, %152, %153 : vector<8x128xi1>, vector<8x128xf32>
    %155 = arith.addf %146, %154 : vector<8x128xf32>
    %c0_22 = arith.constant 0 : index
    %c0_23 = arith.constant 0 : index
    %156 = vector.load %arg3[%c0_22, %c0_23] : memref<128x128xf32, #tpu.memory_space<vmem>>, vector<128x128xf32>
    %cst_24 = arith.constant dense<0.000000e+00> : vector<8x128xf32>
    %157 = tpu.matmul %155, %156, %cst_24 {dimension_numbers = #tpu.dot_dimension_numbers<[1], [0], [0], [1], [0, 0, 1, 1], [], []>} : vector<8x128xf32>, vector<128x128xf32>, vector<8x128xf32> -> vector<8x128xf32>
    %c0_25 = arith.constant 0 : index
    %c0_26 = arith.constant 0 : index
    %158 = vector.load %arg4[%c0_25, %c0_26] : memref<128x128xf32, #tpu.memory_space<vmem>>, vector<128x128xf32>
    %cst_27 = arith.constant dense<0.000000e+00> : vector<8x128xf32>
    %159 = tpu.matmul %157, %158, %cst_27 {dimension_numbers = #tpu.dot_dimension_numbers<[1], [0], [0], [1], [0, 0, 1, 1], [], []>} : vector<8x128xf32>, vector<128x128xf32>, vector<8x128xf32> -> vector<8x128xf32>
    %c0_28 = arith.constant 0 : index
    %c0_29 = arith.constant 0 : index
    %160 = vector.load %arg5[%c0_28, %c0_29] : memref<1x128xf32, #tpu.memory_space<vmem>>, vector<1x128xf32>
    %161 = vector.broadcast %160 : vector<1x128xf32> to vector<8x128xf32>
    %162 = arith.addf %159, %161 : vector<8x128xf32>
    %163 = math.tanh %162 : vector<8x128xf32>
    %c0_30 = arith.constant 0 : index
    %c0_31 = arith.constant 0 : index
    %164 = vector.load %arg6[%c0_30, %c0_31] : memref<128x128xf32, #tpu.memory_space<vmem>>, vector<128x128xf32>
    %cst_32 = arith.constant dense<0.000000e+00> : vector<8x128xf32>
    %165 = tpu.matmul %163, %164, %cst_32 {dimension_numbers = #tpu.dot_dimension_numbers<[1], [0], [0], [1], [0, 0, 1, 1], [], []>} : vector<8x128xf32>, vector<128x128xf32>, vector<8x128xf32> -> vector<8x128xf32>
    %c0_33 = arith.constant 0 : index
    %c0_34 = arith.constant 0 : index
    %166 = vector.load %arg7[%c0_33, %c0_34] : memref<1x128xf32, #tpu.memory_space<vmem>>, vector<1x128xf32>
    %167 = vector.broadcast %166 : vector<1x128xf32> to vector<8x128xf32>
    %168 = arith.addf %165, %167 : vector<8x128xf32>
    %169 = tpu.iota {dimensions = array<i32: 1>} : vector<8x128xi32>
    %c8_i32 = arith.constant 8 : i32
    %170 = vector.broadcast %c8_i32 : i32 to vector<8x128xi32>
    %171 = arith.cmpi slt, %169, %170 : vector<8x128xi32>
    %cst_35 = arith.constant -1.000000e+30 : f32
    %172 = vector.broadcast %cst_35 : f32 to vector<8x128xf32>
    %173 = arith.select %171, %168, %172 : vector<8x128xi1>, vector<8x128xf32>
    %cst_36 = arith.constant dense<0xFF800000> : vector<8xf32>
    %174 = vector.multi_reduction <maximumf>, %173, %cst_36 [1] : vector<8x128xf32> to vector<8xf32>
    %175 = vector.shape_cast %174 : vector<8xf32> to vector<8x1xf32>
    %176 = vector.broadcast %175 : vector<8x1xf32> to vector<8x128xf32>
    %177 = arith.subf %173, %176 : vector<8x128xf32>
    %178 = math.exp %177 : vector<8x128xf32>
    %cst_37 = arith.constant dense<0.000000e+00> : vector<8xf32>
    %179 = vector.multi_reduction <add>, %178, %cst_37 [1] : vector<8x128xf32> to vector<8xf32>
    %180 = vector.shape_cast %179 : vector<8xf32> to vector<8x1xf32>
    %cst_38 = arith.constant 1.000000e+00 : f32
    %181 = vector.broadcast %cst_38 : f32 to vector<8x1xf32>
    %182 = arith.divf %181, %180 : vector<8x1xf32>
    %183 = vector.broadcast %182 : vector<8x1xf32> to vector<8x128xf32>
    %184 = arith.mulf %178, %183 : vector<8x128xf32>
    %c0_39 = arith.constant 0 : index
    %c0_40 = arith.constant 0 : index
    %185 = vector.load %arg8[%c0_39, %c0_40] : memref<128x128xf32, #tpu.memory_space<vmem>>, vector<128x128xf32>
    %cst_41 = arith.constant dense<0.000000e+00> : vector<8x128xf32>
    %186 = tpu.matmul %184, %185, %cst_41 {dimension_numbers = #tpu.dot_dimension_numbers<[1], [0], [0], [1], [0, 0, 1, 1], [], []>} : vector<8x128xf32>, vector<128x128xf32>, vector<8x128xf32> -> vector<8x128xf32>
    %187 = arith.addf %168, %186 : vector<8x128xf32>
    %c0_42 = arith.constant 0 : index
    %c0_43 = arith.constant 0 : index
    %188 = vector.load %arg9[%c0_42, %c0_43] : memref<8x128xf32, #tpu.memory_space<vmem>>, vector<8x128xf32>
    tpu.vector_store %arg9[%c0_42, %c0_43], %187 {strides = array<i32>} : memref<8x128xf32, #tpu.memory_space<vmem>>, vector<8x128xf32>,
    return
  }
  func.func @transform_0(%arg0: i32) -> (i32, i32) {
    %c0_i32 = arith.constant 0 : i32
    %c0_i32_0 = arith.constant 0 : i32
    return %arg0, %c0_i32 : i32, i32
  }
  func.func @transform_1(%arg0: i32) -> (i32, i32) {
    %c0_i32 = arith.constant 0 : i32
    %c0_i32_0 = arith.constant 0 : i32
    return %arg0, %c0_i32 : i32, i32
  }
  func.func @transform_2(%arg0: i32) -> (i32, i32) {
    %c0_i32 = arith.constant 0 : i32
    %c0_i32_0 = arith.constant 0 : i32
    %c0_i32_1 = arith.constant 0 : i32
    return %c0_i32, %c0_i32_0 : i32, i32
  }
  func.func @transform_3(%arg0: i32) -> (i32, i32) {
    %c0_i32 = arith.constant 0 : i32
    %c0_i32_0 = arith.constant 0 : i32
    %c0_i32_1 = arith.constant 0 : i32
    return %c0_i32, %c0_i32_0 : i32, i32
  }
  func.func @transform_4(%arg0: i32) -> (i32, i32) {
    %c0_i32 = arith.constant 0 : i32
    %c0_i32_0 = arith.constant 0 : i32
    %c0_i32_1 = arith.constant 0 : i32
    return %c0_i32, %c0_i32_0 : i32, i32
  }
  func.func @transform_5(%arg0: i32) -> (i32, i32) {
    %c0_i32 = arith.constant 0 : i32
    %c0_i32_0 = arith.constant 0 : i32
    %c0_i32_1 = arith.constant 0 : i32
    return %c0_i32, %c0_i32_0 : i32, i32
  }
  func.func @transform_6(%arg0: i32) -> (i32, i32) {
    %c0_i32 = arith.constant 0 : i32
    %c0_i32_0 = arith.constant 0 : i32
    %c0_i32_1 = arith.constant 0 : i32
    return %c0_i32, %c0_i32_0 : i32, i32
  }
  func.func @transform_7(%arg0: i32) -> (i32, i32) {
    %c0_i32 = arith.constant 0 : i32
    %c0_i32_0 = arith.constant 0 : i32
    %c0_i32_1 = arith.constant 0 : i32
    return %c0_i32, %c0_i32_0 : i32, i32
  }
  func.func @transform_8(%arg0: i32) -> (i32, i32) {
    %c0_i32 = arith.constant 0 : i32
    %c0_i32_0 = arith.constant 0 : i32
    return %arg0, %c0_i32 : i32, i32
  }
}

</mosaic_0001>

<bundles_post_ra>
// kernel: tpu_custom_call.1
= control target key start
LH: loop header
LB: loop body
LE: loop exit
PB: predicated region body
PF: predicated region fallthrough
CT: control target
= control target key end

     0   :  { %s2363_s0 = inlined_call_operand.hbm [shape: s32[16,16], index: 0, kind: input, shape index: {}]   ;;  %s2364_s1 = inlined_call_operand.hbm [shape: f32[16,16], index: 1, kind: input, shape index: {}]   ;;  %s2365_s2 = inlined_call_operand.hbm [shape: f32[128,128], index: 2, kind: input, shape index: {}]   ;;  %s2366_s3 = inlined_call_operand.hbm [shape: f32[128,128], index: 3, kind: input, shape index: {}]   ;;  %s2367_s4 = inlined_call_operand.vmem [shape: f32[1,128], index: 4, kind: input, shape index: {}]   ;;  %s2368_s5 = inlined_call_operand.hbm [shape: f32[128,128], index: 5, kind: input, shape index: {}]   ;;  %s2369_s6 = inlined_call_operand.vmem [shape: f32[1,128], index: 6, kind: input, shape index: {}]   ;;  %s2370_s7 = inlined_call_operand.hbm [shape: f32[128,128], index: 7, kind: input, shape index: {}]   ;;  %s2371_s8 = inlined_call_operand.hbm [shape: f32[16,128], index: 8, kind: output, shape index: {}]  }
   0x1   :  { %2376 = sst [smem:[#allocation21_spill]] %s2365_s2 }
   0x2   :  { %2377 = sst [smem:[#allocation22_spill]] %s2366_s3 }
   0x3   :  { %2378 = sst [smem:[#allocation23_spill]] %s2368_s5 }
   0x4   :  { %2379 = sst [smem:[#allocation24_spill]] %s2370_s7 }
   0x5   :  { %13 = vsyncpa [#allocation3], 0 }
   0x6   :  { %15 = vsyncpa [#allocation3 + $0x1], 0 }
   0x7   :  { %16 = vsyncpa [#allocation6], 0 }
   0x8   :  { %18 = vsyncpa [#allocation6 + $0x1], 0 }
   0x9   :  { %19 = vsyncpa [#allocation9], 0 }
   0xa   :  { %20 = vsyncpa [#allocation12], 0 }
   0xb   :  { %21 = vsyncpa [#allocation4], 0 }
   0xc   :  { %23 = vsyncpa [#allocation4 + $0x1], 0  ;;  %s1918_s27 = smov 0   ;;  %s1920_s28 = smov 0  }
   0xd   :  { %s1922_s29 = smov 0   ;;  %s1924_s30 = smov 0  }
   0xe LB: > { %s1845_s9 = smov [#allocation7]   ;;  %s1939_s11 = sadd.s32 4294967295, %s1843_s30   ;;  %s1843_s30 = sphi %s1924_s30, %s2409_s30   ;;  %s1839_s29 = sphi %s1922_s29, %s2408_s29   ;;  %s1835_s28 = sphi %s1920_s28, %s2407_s28   ;;  %s1831_s27 = sphi %s1918_s27, %s2406_s27  }
   0xf   : > { %s250_s10 = sshll.u32 %s1845_s9, 4  ;;  %p1108_p0 = scmp.ge.s32.totalorder %s1843_s30, 1  ;;  %s1944_s10 = int_to_ptr.vmem [resolvable:$true] %s250_s10 }
  0x10   : > { %p2372_p1 = scmp.eq.s32.totalorder %s1939_s11, 0  ;;  %p238_p2 = scmp.lt.s32.totalorder %s1843_s30, 3 }
  0x11   : > { %s1846_s13 = smov [#allocation8]   ;;  %s1847_s16 = smov [#allocation10]  }
  0x12   : > { %p1946_p3 = pnand %p1108_p0, %p238_p2  ;;  %s263_s14 = sshll.u32 %s1846_s13, 4  ;;  %s1959_s14 = int_to_ptr.vmem [resolvable:$true] %s263_s14 }
  0x13   : > { %s279_s17 = sshll.u32 %s1847_s16, 4  ;;  %s2382_s2 = sld [smem:[#allocation21_spill]]  ;;  %s1961_s17 = int_to_ptr.vmem [resolvable:$true] %s279_s17 }
  0x14   : > { %s2380_s12 = scalar_select %p1946_p3, 1, 0 }
  0x15   : > { %p1458_p5 = pneg %p1946_p3 }
  0x17   : > { %p1955_p6 = pnand %p1458_p5, %p2372_p1 }
  0x19   : > { %s1589_s20 = scalar_lea.hbm %s2382_s2, 2048  ;;  %p1971_p8 = pneg %p1955_p6 }
  0x1a   : > { %p1590_p7 = scmp.ne.s32.totalorder %s2382_s2, %s1589_s20  ;;  %p1596_p11 = scmp.lt.u32.totalorder %s1589_s20, %s2382_s2 }
  0x1c   : > { %p1592_p9 = pnand %p1971_p8, %p1590_p7 }
  0x1e   : > { %p1593_p10 = pneg %p1592_p9 }
  0x20   : > { %p1598_p12 = pnand %p1596_p11, %p1593_p10 }
  0x22   : > { %1601 = shalt.err (!%p1598_p12)
}
  0x23   : > { %s1602_s26 = scalar_lea.vmem %s1944_s10, 2048  ;;  %p1610_p5 = scmp.lt.s32.totalorder %s1944_s10, %s1944_s10 }
  0x24   : > { %p1603_p13 = scmp.ne.s32.totalorder %s1944_s10, %s1602_s26  ;;  %p1611_p4 = scmp.lt.s32.totalorder %s1602_s26, %s1602_s26 }
  0x26   : > { %p1605_p0 = pnand %p1603_p13, %p1971_p8  ;;  %p1612_p7 = por %p1611_p4, %p1610_p5 }
  0x28   : > { %p1606_p2 = pneg %p1605_p0 }
  0x2a   : > { %p1613_p9 = pnand %p1612_p7, %p1606_p2 }
  0x2c   : > { %1616 = shalt.err (!%p1613_p9)
}
  0x2d   : > { %s1848_s9 = smov 128   ;;  %s1849_s13 = smov 8  }
  0x2e   : > { %1461 = dma.hbm_to_vmem [thread:$0]  (!%p1955_p6), %s2382_s2, 2048, %s1944_s10, [#allocation6], %s1848_s9, %s1848_s9, %s1849_s13  }
  0x2f   : > { %s2384_s3 = sld [smem:[#allocation22_spill]] }
  0x35   : > { %s1617_s21 = scalar_lea.hbm %s2384_s3, 2048 }
  0x36   : > { %p1618_p4 = scmp.ne.s32.totalorder %s2384_s3, %s1617_s21  ;;  %p1624_p12 = scmp.lt.u32.totalorder %s1617_s21, %s2384_s3 }
  0x38   : > { %p1620_p10 = pnand %p1618_p4, %p1971_p8 }
  0x3a   : > { %p1621_p11 = pneg %p1620_p10 }
  0x3c   : > { %p1626_p13 = pnand %p1624_p12, %p1621_p11 }
  0x3e   : > { %1629 = shalt.err (!%p1626_p13)
}
  0x3f   : > { %s1630_s10 = scalar_lea.vmem %s1959_s14, 2048  ;;  %p1638_p7 = scmp.lt.s32.totalorder %s1959_s14, %s1959_s14 }
  0x40   : > { %p1631_p0 = scmp.ne.s32.totalorder %s1959_s14, %s1630_s10  ;;  %p1639_p9 = scmp.lt.s32.totalorder %s1630_s10, %s1630_s10 }
  0x42   : > { %p1633_p2 = pnand %p1631_p0, %p1971_p8  ;;  %p1640_p4 = por %p1639_p9, %p1638_p7 }
  0x44   : > { %p1634_p5 = pneg %p1633_p2 }
  0x46   : > { %p1641_p10 = pnand %p1640_p4, %p1634_p5 }
  0x48   : > { %1644 = shalt.err (!%p1641_p10)
}
  0x49   : > { %1464 = dma.hbm_to_vmem [thread:$0]  (!%p1955_p6), %s2384_s3, 2048, %s1959_s14, [#allocation9], %s1848_s9, %s1848_s9, %s1849_s13  }
  0x4a   : > { %s2385_s5 = sld [smem:[#allocation23_spill]] }
  0x50   : > { %s1645_s21 = scalar_lea.hbm %s2385_s5, 2048 }
  0x51   : > { %p1646_p11 = scmp.ne.s32.totalorder %s2385_s5, %s1645_s21  ;;  %p1652_p0 = scmp.lt.u32.totalorder %s1645_s21, %s2385_s5 }
  0x53   : > { %p1648_p12 = pnand %p1646_p11, %p1971_p8 }
  0x55   : > { %p1649_p13 = pneg %p1648_p12 }
  0x57   : > { %p1654_p2 = pnand %p1652_p0, %p1649_p13 }
  0x59   : > { %1657 = shalt.err (!%p1654_p2)
}
  0x5a   : > { %s1658_s14 = scalar_lea.vmem %s1961_s17, 2048  ;;  %p1666_p4 = scmp.lt.s32.totalorder %s1961_s17, %s1961_s17 }
  0x5b   : > { %p1659_p5 = scmp.ne.s32.totalorder %s1961_s17, %s1658_s14  ;;  %p1667_p10 = scmp.lt.s32.totalorder %s1658_s14, %s1658_s14 }
  0x5d   : > { %p1661_p7 = pnand %p1659_p5, %p1971_p8  ;;  %p1668_p11 = por %p1667_p10, %p1666_p4 }
  0x5f   : > { %p1662_p9 = pneg %p1661_p7 }
  0x61   : > { %p1669_p12 = pnand %p1668_p11, %p1662_p9 }
  0x63   : > { %1672 = shalt.err (!%p1669_p12)
}
  0x64   : > { %1467 = dma.hbm_to_vmem [thread:$0]  (!%p1955_p6), %s2385_s5, 2048, %s1961_s17, [#allocation9], %s1848_s9, %s1848_s9, %s1849_s13  }
  0x65   : > { %s1850_s18 = smov [#allocation11]   ;;  %s2386_s7 = sld [smem:[#allocation24_spill]] }
  0x66   : > { %s295_s19 = sshll.u32 %s1850_s18, 4  ;;  %s296_s19 = int_to_ptr.vmem [resolvable:$true] %s295_s19 }
  0x6b   : > { %s1673_s22 = scalar_lea.hbm %s2386_s7, 2048 }
  0x6c   : > { %p1674_p13 = scmp.ne.s32.totalorder %s2386_s7, %s1673_s22  ;;  %p1680_p5 = scmp.lt.u32.totalorder %s1673_s22, %s2386_s7 }
  0x6e   : > { %p1676_p0 = pnand %p1674_p13, %p1971_p8 }
  0x70   : > { %p1677_p2 = pneg %p1676_p0 }
  0x72   : > { %p1682_p7 = pnand %p1680_p5, %p1677_p2 }
  0x74   : > { %1685 = shalt.err (!%p1682_p7)
}
  0x75   : > { %s1686_s17 = scalar_lea.vmem %s296_s19, 2048  ;;  %p1694_p11 = scmp.lt.s32.totalorder %s296_s19, %s296_s19 }
  0x76   : > { %p1687_p9 = scmp.ne.s32.totalorder %s296_s19, %s1686_s17  ;;  %p1695_p12 = scmp.lt.s32.totalorder %s1686_s17, %s1686_s17 }
  0x78   : > { %p1689_p4 = pnand %p1687_p9, %p1971_p8  ;;  %p1696_p1 = por %p1695_p12, %p1694_p11 }
  0x7a   : > { %p1690_p10 = pneg %p1689_p4 }
  0x7c   : > { %p1697_p3 = pnand %p1696_p1, %p1690_p10 }
  0x7e   : > { %1700 = shalt.err (!%p1697_p3)
}
  0x7f   : > { %1470 = dma.hbm_to_vmem [thread:$0]  (!%p1955_p6), %s2386_s7, 2048, %s296_s19, [#allocation12], %s1848_s9, %s1848_s9, %s1849_s13  }
  0x80   : > { %s1107_s15 = sadd.s32 4294967294, %s1843_s30   ;;  %s2070_s23 = sadd.s32 1, %s1843_s30  }
  0x81   : > { %s33_s18 = ssub.s32 %s1843_s30, %s2070_s23  ;;  %s36_s20 = sadd.s32 1, %s1839_s29 }
  0x82   : > { %p34_p1 = scmp.eq.s32.totalorder %s33_s18, 0  ;;  %p43_p3 = scmp.ne.s32.totalorder %s1839_s29, %s1835_s28 }
  0x83   : > { %p44_p8 = scmp.eq.s32.totalorder %s1843_s30, 0  ;;  %p49_p13 = scmp.ne.s32.totalorder %s1835_s28, %s1831_s27 }
  0x84   : > { %s2081_s21 = scalar_select %p34_p1, %s1839_s29, %s36_s20  }
  0x85   : > { %p2083_p0 = por %p44_p8, %p43_p3  ;;  %p2389_p2 = scmp.eq.s32.totalorder %s1939_s11, 0 }
  0x86   : > { %2387 = sst [smem:[#allocation20_spill]] %s2081_s21  ;;  %p225_p5 = scmp.eq.s32.totalorder %s1939_s11, 1 }
  0x87   : > { %p2089_p6 = por %p2389_p2, %p49_p13  ;;  %p231_p7 = scmp.eq.s32.totalorder %s1107_s15, 1 }
  0x88   : > { %p1486_p9 = scmp.lt.s32.totalorder %s1843_s30, 2  ;;  %s309_s13 = sand.u32 1, %s1839_s29  }
  0x89   : > { %s2390_s9 = scalar_select %p2089_p6, 1, 0 }
  0x8a   : > { %p2096_p4 = por %p225_p5, %p43_p3  ;;  %p2100_p10 = por %p231_p7, %p49_p13 }
  0x8b   : > { %s2104_s25 = sshll.u32 %s309_s13, 3  ;;  %s1115_s26 = sshll.u32 %s1843_s30, 7 }
  0x8c   : > { %s2391_s19 = scalar_select %p2096_p4, 1, 0 }
  0x8d   : > { %s2392_s24 = scalar_select %p2100_p10, 1, 0 }
  0x8e   : > { %s2110_s10 = scalar_lea.hbm %s2363_s0, %s1115_s26  ;;  %s313_s16 = scalar_lea.vmem [#allocation2], %s2104_s25 }
  0x8f   : > { %s320_s15 = sshll.u32 %s313_s16, 4  ;;  %p2117_p11 = pnand %p1486_p9, %p2083_p0  ;;  %s2113_s15 = int_to_ptr.vmem [resolvable:$true] %s320_s15 }
  0x90   : > { %s2124_s14 = scalar_lea.hbm %s2364_s1, %s1115_s26  ;;  %s327_s17 = sand.u32 1, %s1843_s30  }
  0x91   : > { %s310_s3 = scalar_lea.sflag [#allocation3], %s309_s13  ;;  %s1701_s5 = scalar_lea.hbm %s2110_s10, 128 }
  0x92   : > { %p1702_p12 = scmp.ne.s32.totalorder %s2110_s10, %s1701_s5  ;;  %p1703_p1 = pneg %p2117_p11 }
  0x93   : > { %s1706_s7 = scalar_lea.hbm %s2363_s0, 256  ;;  %p1707_p13 = scmp.lt.u32.totalorder %s2110_s10, %s2363_s0 }
  0x94   : > { %p1704_p3 = pnand %p1703_p1, %p1702_p12  ;;  %p1708_p0 = scmp.lt.u32.totalorder %s1706_s7, %s1701_s5 }
  0x95   : > { %p1710_p5 = scmp.lt.u32.totalorder %s1701_s5, %s2110_s10 }
  0x96   : > { %p1705_p8 = pneg %p1704_p3  ;;  %p1709_p2 = por %p1708_p0, %p1707_p13 }
  0x98   : > { %p1711_p7 = por %p1710_p5, %p1709_p2 }
  0x9a   : > { %p1712_p9 = pnand %p1711_p7, %p1705_p8 }
  0x9c   : > { %1715 = shalt.err (!%p1712_p9)
}
  0x9d   : > { %s1716_s13 = scalar_lea.vmem %s2113_s15, 128  ;;  %s1851_s26 = smov [#allocation2]  }
  0x9e   : > { %p1717_p12 = scmp.ne.s32.totalorder %s2113_s15, %s1716_s13  ;;  %s1721_s20 = sshll.u32 %s1851_s26, 4  ;;  %s1722_s20 = int_to_ptr.vmem [resolvable:$false] %s1721_s20 }
  0x9f   : > { %s1723_s21 = scalar_lea.vmem %s1722_s20, 256  ;;  %p1724_p4 = scmp.lt.s32.totalorder %s2113_s15, %s1722_s20 }
  0xa0   : > { %p1719_p3 = pnand %p1717_p12, %p1703_p1  ;;  %p1725_p13 = scmp.lt.s32.totalorder %s1723_s21, %s1716_s13 }
  0xa2   : > { %p1720_p10 = pneg %p1719_p3  ;;  %p1726_p0 = por %p1725_p13, %p1724_p4 }
  0xa4   : > { %p1727_p2 = pnand %p1726_p0, %p1720_p10 }
  0xa6   : > { %1730 = shalt.err (!%p1727_p2)
}
  0xa7   : > { %1474 = dma.hbm_to_vmem [thread:$0]  (!%p2117_p11), %s2110_s10, 128, %s2113_s15, %s310_s3  }
  0xa8   : > { %s331_s5 = scalar_lea.vmem [#allocation5], %s2104_s25  ;;  %s328_s22 = scalar_lea.sflag [#allocation6], %s327_s17 }
  0xa9   : > { %s338_s7 = sshll.u32 %s331_s5, 4  ;;  %s1731_s16 = scalar_lea.hbm %s2124_s14, 128  ;;  %s339_s7 = int_to_ptr.vmem [resolvable:$true] %s338_s7 }
  0xaa   : > { %p1732_p4 = scmp.ne.s32.totalorder %s2124_s14, %s1731_s16  ;;  %s1736_s26 = scalar_lea.hbm %s2364_s1, 256 }
  0xab   : > { %p1737_p5 = scmp.lt.u32.totalorder %s2124_s14, %s2364_s1  ;;  %p1738_p7 = scmp.lt.u32.totalorder %s1736_s26, %s1731_s16 }
  0xac   : > { %p1734_p10 = pnand %p1732_p4, %p1703_p1  ;;  %p1740_p12 = scmp.lt.u32.totalorder %s1731_s16, %s2124_s14 }
  0xad   : > { %p1739_p9 = por %p1738_p7, %p1737_p5 }
  0xae   : > { %p1735_p8 = pneg %p1734_p10 }
  0xaf   : > { %p1741_p3 = por %p1740_p12, %p1739_p9 }
  0xb1   : > { %p1742_p13 = pnand %p1741_p3, %p1735_p8 }
  0xb3   : > { %1745 = shalt.err (!%p1742_p13)
}
  0xb4   : > { %s1746_s3 = scalar_lea.vmem %s339_s7, 128  ;;  %s1852_s25 = smov [#allocation5]  }
  0xb5   : > { %p1747_p0 = scmp.ne.s32.totalorder %s339_s7, %s1746_s3  ;;  %s1751_s10 = sshll.u32 %s1852_s25, 4  ;;  %s1752_s10 = int_to_ptr.vmem [resolvable:$false] %s1751_s10 }
  0xb6   : > { %s1753_s15 = scalar_lea.vmem %s1752_s10, 256  ;;  %p1754_p10 = scmp.lt.s32.totalorder %s339_s7, %s1752_s10 }
  0xb7   : > { %p1749_p2 = pnand %p1747_p0, %p1703_p1  ;;  %p1755_p6 = scmp.lt.s32.totalorder %s1753_s15, %s1746_s3 }
  0xb9   : > { %p1750_p4 = pneg %p1749_p2  ;;  %p1756_p5 = por %p1755_p6, %p1754_p10 }
  0xbb   : > { %p1757_p7 = pnand %p1756_p5, %p1750_p4 }
  0xbd   : > { %1760 = shalt.err (!%p1757_p7)
}
  0xbe   : > { %1477 = dma.hbm_to_vmem [thread:$0]  (!%p2117_p11), %s2124_s14, 128, %s339_s7, %s328_s22  }
  0xbf   : > { %p2394_p8 = scmp.ne.s32.totalorder %s2380_s12, 0 }
  0xc0   : > { %s2177_s17 = sand.u32 (!%p2394_p8), 1, %s1835_s28   ;;  %p2395_p6 = scmp.ne.s32.totalorder (!%p2394_p8), %s2390_s9, 0 }
  0xc1   : > { %347 = sbr.rel (%p2394_p8) target bundleno = 1757 (0x6dd), region = 52  ;;  %s2180_s5 = sshll.u32 (!%p2394_p8), %s2177_s17, 3 }
  0xc2   : > { %s350_s16 = scalar_lea.sflag (!%p2394_p8), [#allocation3], %s2177_s17  ;;  %s353_s2 = scalar_lea.vmem (!%p2394_p8), [#allocation2], %s2180_s5 }
  0xc8   : > { %1806 = dma.done.wait (%p2395_p6), %s350_s16, 128  }
  0xc9   : > { %1808 = vsyncadd (%p2395_p6), %s350_s16, 4294967168  ;;  %s358_s12 = sand.u32 1, %s1939_s11   ;;  %s362_s14 = scalar_lea.vmem [#allocation5], %s2180_s5 }
  0xca   : > { %s359_s18 = scalar_lea.sflag [#allocation6], %s358_s12 }
  0xcb   : > { %1810 = dma.done.wait (%p2395_p6), %s359_s18, 128  }
  0xcc   : > { %1812 = vsyncadd (%p2395_p6), %s359_s18, 4294967168  ;;  %p2396_p11 = scmp.eq.s32.totalorder %s1939_s11, 0 }
  0xce   : > { %1814 = dma.done.wait (%p2396_p11), [#allocation6], 2048   ;;  %p2397_p1 = pmov %p2396_p11 }
  0xd0   : > { %1816 = vsyncadd (%p2397_p1), [#allocation6], 4294965248  ;;  %p2398_p9 = pmov %p2397_p1 }
  0xd1   : > { %p2399_p12 = pmov %p2397_p1 }
  0xd2   : > { %1818 = dma.done.wait (%p2398_p9), [#allocation9], 4096  }
  0xd3   : > { %1820 = vsyncadd (%p2399_p12), [#allocation9], 4294963200  ;;  %p2400_p3 = pmov %p2397_p1 }
  0xd4   : > { %p2401_p13 = pmov %p2397_p1 }
  0xd5   : > { %1822 = dma.done.wait (%p2400_p3), [#allocation12], 2048  }
  0xd6   : > { %1824 = vsyncadd (%p2401_p13), [#allocation12], 4294965248  ;;  %v1853_v0 = vmov 1   ;;  %v1854_v1 = vmov 0   ;;  %vm418_vm0 = vcmask 130048   ;;  %v417_v2 = vld [vmem:[%s362_s14] sm:$0xff] }
  0xd7   : > { %1550 = vset.pattern.permute.xlu1 %v1853_v0  ;;  %1549 = vset.pattern.permute.xlu0 %v1854_v1  ;;  %v2206_v3 = vld [vmem:[%s353_s2] sm:$0xff]  ;;  %v419_v4 = vsel %vm418_vm0, %v417_v2, 0.0  ;;  %v1855_v5 = vmov 2   ;;  %v1856_v6 = vmov 3   ;;  %v1857_v7 = vmov 4   ;;  %v591_v27 = vld [vmem:[#allocation7 + $0x10] sm:$0xff] }
  0xd8   : > { %440 = vperm.xlu1 %1550, %v2206_v3   ;;  %420 = vadd.xlane.f32.xlu0 %v419_v4  ;;  %v1858_v8 = vmov 5   ;;  %v1859_v9 = vmov 6   ;;  %v1860_v10 = vmov 8   ;;  %v1861_v11 = vmov 7   ;;  %v589_v23 = vld [vmem:[#allocation7] sm:$0xff]  ;;  %v590_v24 = vld [vmem:[#allocation7 + $0x8] sm:$0xff] }
  0xd9   : > { %v1862_v12 = vmov 11   ;;  %v1863_v13 = vmov 9   ;;  %v1864_v14 = vmov 14   ;;  %v1865_v15 = vmov 10   ;;  %v592_v28 = vld [vmem:[#allocation7 + $0x18] sm:$0xff]  ;;  %v593_v30 = vld [vmem:[#allocation7 + $0x20] sm:$0xff] }
  0xda   : > { %v1866_v16 = vmov 12   ;;  %v1867_v17 = vmov 13   ;;  %v1868_v22 = vmov 15   ;;  %v1341_v25 = vpack.c.bf16 %v590_v24, %v589_v23  ;;  %v594_v31 = vld [vmem:[#allocation7 + $0x28] sm:$0xff]  ;;  %v595_v33 = vld [vmem:[#allocation7 + $0x30] sm:$0xff]  ;;  %v596_v34 = vld [vmem:[#allocation7 + $0x38] sm:$0xff] }
  0xdb   : > { %v1869_v26 = vmov 0.0|0.0   ;;  %v1344_v29 = vpack.c.bf16 %v592_v28, %v591_v27  ;;  %v1347_v32 = vpack.c.bf16 %v594_v31, %v593_v30  ;;  %v1350_v35 = vpack.c.bf16 %v596_v34, %v595_v33  ;;  %v597_v36 = vld [vmem:[#allocation7 + $0x40] sm:$0xff]  ;;  %v598_v37 = vld [vmem:[#allocation7 + $0x48] sm:$0xff]  ;;  %v599_v39 = vld [vmem:[#allocation7 + $0x50] sm:$0xff]  ;;  %s1129_s26 = sshll.u32 %s1939_s11, 7  ;;  %s415_s20 = scalar_lea.vmem [#allocation13], %s2180_s5 }
  0xdc   : > { %1551 = vset.pattern.permute.xlu1 %v1855_v5  ;;  %1340 = vmatprep.subr.bf16.mxu0 %v1869_v26  ;;  %v1353_v38 = vpack.c.bf16 %v598_v37, %v597_v36  ;;  %v600_v40 = vld [vmem:[#allocation7 + $0x58] sm:$0xff]  ;;  %v601_v42 = vld [vmem:[#allocation7 + $0x60] sm:$0xff]  ;;  %v602_v43 = vld [vmem:[#allocation7 + $0x68] sm:$0xff]  ;;  %vm1870_vm1 = vmmov 0   ;;  %v1871_v49 = vmov 0.0   ;;  %v426_v24 = vlaneseq  ;;  %s976_s21 = sshll.u32 %s415_s20, 4  ;;  %s2319_s10 = scalar_lea.hbm %s2371_s8, %s1129_s26  ;;  %s2321_s21 = int_to_ptr.vmem [resolvable:$true] %s976_s21 }
  0xdd   : > { %450 = vperm.xlu1 %1551, %v2206_v3   ;;  %1364 = vmatprep.subr.bf16.mxu1 %v1869_v26  ;;  %v1356_v41 = vpack.c.bf16 %v600_v40, %v599_v39  ;;  %v1359_v44 = vpack.c.bf16 %v602_v43, %v601_v42  ;;  %v603_v45 = vld [vmem:[#allocation7 + $0x70] sm:$0xff]  ;;  %v604_v46 = vld [vmem:[#allocation7 + $0x78] sm:$0xff]  ;;  %v675_v50 = vld [vmem:[#allocation8] sm:$0xff]  ;;  %s963_s15 = scalar_lea.sflag [#allocation4], %s2177_s17  ;;  %s1761_s16 = scalar_lea.vmem %s2321_s21, 128 }
  0xde   : > { %1342 = vmatpush3.bf16.msra.mxu0 %v1341_v25  ;;  %v1362_v47 = vpack.c.bf16 %v604_v46, %v603_v45  ;;  %1232 = vmatprep.mubr.msk.f32.mxu0 %vm1870_vm1, %v1871_v49  ;;  %v676_v51 = vld [vmem:[#allocation8 + $0x8] sm:$0xff]  ;;  %v677_v52 = vld [vmem:[#allocation8 + $0x10] sm:$0xff]  ;;  %v678_v54 = vld [vmem:[#allocation8 + $0x18] sm:$0xff]  ;;  %v2270_v27 = vand.u32 127, %v426_v24  ;;  %p1762_p0 = scmp.ne.s32.totalorder %s2321_s21, %s1761_s16  ;;  %p2402_p2 = scmp.ne.s32.totalorder %s2391_s19, 0 }
  0xdf   : > { %1343 = vmatprep.subr.bf16.mxu0 %v1869_v26  ;;  %1267 = vmatprep.mubr.msk.f32.mxu1 %vm1870_vm1, %v1871_v49  ;;  %v1365_v53 = vpack.c.bf16 %v676_v51, %v675_v50  ;;  %v1368_v56 = vpack.c.bf16 %v678_v54, %v677_v52  ;;  %v679_v57 = vld [vmem:[#allocation8 + $0x20] sm:$0xff]  ;;  %v680_v58 = vld [vmem:[#allocation8 + $0x28] sm:$0xff]  ;;  %v681_v60 = vld [vmem:[#allocation8 + $0x30] sm:$0xff]  ;;  %s1872_s11 = smov [#allocation13]  }
  0xe0   : > { %v1371_v59 = vpack.c.bf16 %v680_v58, %v679_v57  ;;  %v682_v61 = vld [vmem:[#allocation8 + $0x38] sm:$0xff]  ;;  %v685_v4 = vld [vmem:[#allocation8 + $0x50] sm:$0xff]  ;;  %v777_v24 = vld [vmem:[#allocation10 + $0x40] sm:$0xff]  ;;  %p1763_p4 = pnand %p1762_p0, %p2402_p2  ;;  %s1765_s5 = sshll.u32 %s1872_s11, 4  ;;  %s1766_s5 = int_to_ptr.vmem [resolvable:$false] %s1765_s5 }
  0xe1   : > { %1552 = vset.pattern.permute.xlu1 %v1856_v6  ;;  %1366 = vmatpush3.bf16.msra.mxu1 %v1365_v53  ;;  %v1374_v63 = vpack.c.bf16 %v682_v61, %v681_v60  ;;  %s1767_s2 = scalar_lea.vmem %s1766_s5, 256  ;;  %p1768_p5 = scmp.lt.s32.totalorder %s2321_s21, %s1766_s5 }
  0xe2   : > { %460 = vperm.xlu1 %1552, %v2206_v3   ;;  %1345 = vmatpush3.bf16.msra.mxu0 %v1344_v29  ;;  %p1764_p10 = pneg %p1763_p4  ;;  %p1769_p7 = scmp.lt.s32.totalorder %s1767_s2, %s1761_s16 }
  0xe3   : > { %1346 = vmatprep.subr.bf16.mxu0 %v1869_v26  ;;  %1367 = vmatprep.subr.bf16.mxu1 %v1869_v26 }
  0xe4   : > { %p1770_p8 = por %p1769_p7, %p1768_p5 }
  0xe5   : > { %1369 = vmatpush3.bf16.msra.mxu1 %v1368_v56 }
  0xe6   : > { %1553 = vset.pattern.permute.xlu1 %v1857_v7  ;;  %1348 = vmatpush3.bf16.msra.mxu0 %v1347_v32  ;;  %p1771_p6 = pnand %p1770_p8, %p1764_p10 }
  0xe7   : > { %470 = vperm.xlu1 %1553, %v2206_v3   ;;  %1349 = vmatprep.subr.bf16.mxu0 %v1869_v26 }
  0xe8   : > { %1370 = vmatprep.subr.bf16.mxu1 %v1869_v26 }
  0xe9   : > { %1372 = vmatpush3.bf16.msra.mxu1 %v1371_v59 }
  0xea   : > { %1351 = vmatpush3.bf16.msra.mxu0 %v1350_v35  ;;  %1373 = vmatprep.subr.bf16.mxu1 %v1869_v26 }
  0xeb   : > { %1554 = vset.pattern.permute.xlu1 %v1858_v8  ;;  %1352 = vmatprep.subr.bf16.mxu0 %v1869_v26 }
  0xec   : > { %480 = vperm.xlu1 %1554, %v2206_v3  }
  0xed   : > { %1375 = vmatpush3.bf16.msra.mxu1 %v1374_v63 }
  0xee   : > { %429 = vperm.xlu0 %1549, %v2206_v3   ;;  %1354 = vmatpush3.bf16.msra.mxu0 %v1353_v38 }
  0xef   : > { %1355 = vmatprep.subr.bf16.mxu0 %v1869_v26  ;;  %1376 = vmatprep.subr.bf16.mxu1 %v1869_v26 }
  0xf0   : > { %1555 = vset.pattern.permute.xlu1 %v1859_v9 }
  0xf1   : > { %490 = vperm.xlu1 %1555, %v2206_v3  }
  0xf2   : > { %1557 = vset.pattern.permute.xlu0 %v1860_v10  ;;  %1357 = vmatpush3.bf16.msra.mxu0 %v1356_v41 }
  0xf3   : > { %510 = vperm.xlu0 %1557, %v2206_v3   ;;  %1358 = vmatprep.subr.bf16.mxu0 %v1869_v26 }
  0xf5   : > { %1556 = vset.pattern.permute.xlu1 %v1861_v11 }
  0xf6   : > { %500 = vperm.xlu1 %1556, %v2206_v3   ;;  %1360 = vmatpush3.bf16.msra.mxu0 %v1359_v44 }
  0xf7   : > { %1560 = vset.pattern.permute.xlu0 %v1862_v12  ;;  %1361 = vmatprep.subr.bf16.mxu0 %v1869_v26 }
  0xf8   : > { %540 = vperm.xlu0 %1560, %v2206_v3  }
  0xfa   : > { %1558 = vset.pattern.permute.xlu1 %v1863_v13  ;;  %1363 = vmatpush3.bf16.msra.mxu0 %v1362_v47 }
  0xfb   : > { %520 = vperm.xlu1 %1558, %v2206_v3   ;;  %1388 = vmatprep.subr.bf16.mxu0 %v1869_v26 }
  0xfc   : > { %1563 = vset.pattern.permute.xlu0 %v1864_v14 }
  0xfd   : > { %570 = vperm.xlu0 %1563, %v2206_v3  }
  0xff   : > { %1559 = vset.pattern.permute.xlu1 %v1865_v15 }
 0x100   : > { %530 = vperm.xlu1 %1559, %v2206_v3  }
 0x101   : > { %1570 = vset.pattern.permute.xlu0 %v1859_v9 }
 0x104   : > { %1561 = vset.pattern.permute.xlu1 %v1866_v16 }
 0x105   : > { %550 = vperm.xlu1 %1561, %v2206_v3  }
 0x109   : > { %1562 = vset.pattern.permute.xlu1 %v1867_v17 }
 0x10a   : > { %560 = vperm.xlu1 %1562, %v2206_v3  }
 0x10e   : > { %1564 = vset.pattern.permute.xlu1 %v1854_v1  ;;  %v684_v1 = vld [vmem:[#allocation8 + $0x48] sm:$0xff] }
 0x157   : > { %v2255_v48 = vpop.permute.xlu1 %440 }
 0x158   : > { %vm442_vm2 = vcmp.eq.s32.totalorder %v2255_v48, %v2270_v27 }
 0x15c   : > { %v451_v55 = vpop.permute.xlu1 %450 }
 0x15d   : > { %vm452_vm4 = vcmp.eq.s32.totalorder %v451_v55, %v2270_v27 }
 0x161   : > { %v461_v62 = vpop.permute.xlu1 %460 }
 0x162   : > { %vm462_vm5 = vcmp.eq.s32.totalorder %v461_v62, %v2270_v27 }
 0x165   : > { %v421_v18 = vpop.xlane.xlu0 %420 }
 0x166   : > { %v422_v19 = vmax.f32 %v421_v18, 1.0 }
 0x168   : > { %1581 = vrcp.f32 %v422_v19 }
 0x172   : > { %v1582_v20 = vpop.eup %1581 }
 0x173   : > { %v2225_v21 = vmul.f32 %v1582_v20, %v417_v2  ;;  %v471_v2 = vpop.permute.xlu1 %470 }
 0x174   : > { %vm472_vm6 = vcmp.eq.s32.totalorder %v471_v2, %v2270_v27 }
 0x175   : > { %434 = vperm.xlu1 %1564, %v2225_v21   ;;  %494 = vperm.xlu0 %1570, %v2225_v21  }
 0x177   : > { %v481_v9 = vpop.permute.xlu1 %480 }
 0x178   : > { %vm482_vm7 = vcmp.eq.s32.totalorder %v481_v9, %v2270_v27 }
 0x179   : > { %1565 = vset.pattern.permute.xlu1 %v1853_v0  ;;  %1573 = vset.pattern.permute.xlu0 %v1863_v13  ;;  %v683_v0 = vld [vmem:[#allocation8 + $0x40] sm:$0xff] }
 0x17a   : > { %444 = vperm.xlu1 %1565, %v2225_v21   ;;  %524 = vperm.xlu0 %1573, %v2225_v21  }
 0x17b   : > { %v491_v13 = vpop.permute.xlu1 %490 }
 0x17c   : > { %vm492_vm8 = vcmp.eq.s32.totalorder %v491_v13, %v2270_v27  ;;  %v770_v13 = vld [vmem:[#allocation10 + $0x8] sm:$0xff] }
 0x17e   : > { %1566 = vset.pattern.permute.xlu1 %v1855_v5  ;;  %1576 = vset.pattern.permute.xlu0 %v1866_v16  ;;  %v686_v5 = vld [vmem:[#allocation8 + $0x58] sm:$0xff] }
 0x17f   : > { %454 = vperm.xlu1 %1566, %v2225_v21   ;;  %554 = vperm.xlu0 %1576, %v2225_v21  }
 0x183   : > { %1567 = vset.pattern.permute.xlu1 %v1856_v6  ;;  %1580 = vset.pattern.permute.xlu0 %v1868_v22  ;;  %v1380_v6 = vpack.c.bf16 %v686_v5, %v685_v4 }
 0x184   : > { %464 = vperm.xlu1 %1567, %v2225_v21   ;;  %584 = vperm.xlu0 %1580, %v2225_v21  }
 0x188   : > { %1568 = vset.pattern.permute.xlu1 %v1857_v7  ;;  %v687_v7 = vld [vmem:[#allocation8 + $0x60] sm:$0xff] }
 0x189   : > { %474 = vperm.xlu1 %1568, %v2225_v21  }
 0x18d   : > { %1569 = vset.pattern.permute.xlu1 %v1858_v8  ;;  %v688_v8 = vld [vmem:[#allocation8 + $0x68] sm:$0xff] }
 0x18e   : > { %484 = vperm.xlu1 %1569, %v2225_v21  }
 0x192   : > { %1571 = vset.pattern.permute.xlu1 %v1861_v11  ;;  %v689_v11 = vld [vmem:[#allocation8 + $0x70] sm:$0xff] }
 0x193   : > { %504 = vperm.xlu1 %1571, %v2225_v21  }
 0x197   : > { %1572 = vset.pattern.permute.xlu1 %v1860_v10  ;;  %v1383_v10 = vpack.c.bf16 %v688_v8, %v687_v7 }
 0x198   : > { %514 = vperm.xlu1 %1572, %v2225_v21  }
 0x19c   : > { %1574 = vset.pattern.permute.xlu1 %v1865_v15  ;;  %v501_v15 = vpop.permute.xlu1 %500 }
 0x19d   : > { %534 = vperm.xlu1 %1574, %v2225_v21   ;;  %vm502_vm9 = vcmp.eq.s32.totalorder %v501_v15, %v2270_v27 }
 0x1a0   : > { %v521_v16 = vpop.permute.xlu1 %520 }
 0x1a1   : > { %1575 = vset.pattern.permute.xlu1 %v1862_v12  ;;  %v690_v12 = vld [vmem:[#allocation8 + $0x78] sm:$0xff]  ;;  %vm522_vm11 = vcmp.eq.s32.totalorder %v521_v16, %v2270_v27 }
 0x1a2   : > { %544 = vperm.xlu1 %1575, %v2225_v21   ;;  %v772_v16 = vld [vmem:[#allocation10 + $0x18] sm:$0xff] }
 0x1a6   : > { %1577 = vset.pattern.permute.xlu1 %v1867_v17  ;;  %v531_v17 = vpop.permute.xlu1 %530 }
 0x1a7   : > { %564 = vperm.xlu1 %1577, %v2225_v21   ;;  %vm532_vm12 = vcmp.eq.s32.totalorder %v531_v17, %v2270_v27 }
 0x1aa   : > { %v551_v18 = vpop.permute.xlu1 %550 }
 0x1ab   : > { %1578 = vset.pattern.permute.xlu1 %v1864_v14  ;;  %v1386_v14 = vpack.c.bf16 %v690_v12, %v689_v11  ;;  %vm552_vm14 = vcmp.eq.s32.totalorder %v551_v18, %v2270_v27  ;;  %v769_v12 = vld [vmem:[#allocation10] sm:$0xff] }
 0x1ac   : > { %574 = vperm.xlu1 %1578, %v2225_v21   ;;  %v1389_v15 = vpack.c.bf16 %v770_v13, %v769_v12  ;;  %v773_v18 = vld [vmem:[#allocation10 + $0x20] sm:$0xff] }
 0x1ae   : > { %v561_v19 = vpop.permute.xlu1 %560 }
 0x1af   : > { %vm562_vm15 = vcmp.eq.s32.totalorder %v561_v19, %v2270_v27  ;;  %v774_v19 = vld [vmem:[#allocation10 + $0x28] sm:$0xff] }
 0x1b0   : > { %1579 = vset.pattern.permute.xlu1 %v1868_v22  ;;  %v430_v22 = vpop.permute.xlu0 %429 }
 0x1b1   : > { %580 = vperm.xlu1 %1579, %v2206_v3   ;;  %v1377_v3 = vpack.c.bf16 %v684_v1, %v683_v0  ;;  %vm431_vm3 = vcmp.eq.s32.totalorder %v430_v22, %v2270_v27  ;;  %v776_v22 = vld [vmem:[#allocation10 + $0x38] sm:$0xff] }
 0x1b3   : > { %1378 = vmatpush3.bf16.msra.mxu1 %v1377_v3 }
 0x1b4   : > { %1379 = vmatprep.subr.bf16.mxu1 %v1869_v26  ;;  %v511_v25 = vpop.permute.xlu0 %510 }
 0x1b5   : > { %vm512_vm10 = vcmp.eq.s32.totalorder %v511_v25, %v2270_v27  ;;  %v778_v25 = vld [vmem:[#allocation10 + $0x48] sm:$0xff] }
 0x1b7   : > { %1381 = vmatpush3.bf16.msra.mxu1 %v1380_v6 }
 0x1b8   : > { %1382 = vmatprep.subr.bf16.mxu1 %v1869_v26  ;;  %v541_v29 = vpop.permute.xlu0 %540 }
 0x1b9   : > { %vm542_vm13 = vcmp.eq.s32.totalorder %v541_v29, %v2270_v27 }
 0x1bb   : > { %1384 = vmatpush3.bf16.msra.mxu1 %v1383_v10 }
 0x1bc   : > { %1385 = vmatprep.subr.bf16.mxu1 %v1869_v26  ;;  %v571_v36 = vpop.permute.xlu0 %570 }
 0x1bd   : > { %vm572_vm0 = vcmp.eq.s32.totalorder %v571_v36, %v2270_v27 }
 0x1bf   : > { %1387 = vmatpush3.bf16.msra.mxu1 %v1386_v14  ;;  %v771_v14 = vld [vmem:[#allocation10 + $0x10] sm:$0xff] }
 0x1c0   : > { %1412 = vmatprep.subr.bf16.mxu1 %v1869_v26  ;;  %v1392_v17 = vpack.c.bf16 %v772_v16, %v771_v14 }
 0x1f4   : > { %v435_v20 = vpop.permute.xlu1 %434  ;;  %v495_v44 = vpop.permute.xlu0 %494 }
 0x1f5   : > { %v437_v32 = vsel %vm431_vm3, %v435_v20, 0.0  ;;  %v497_v46 = vsel %vm492_vm8, %v495_v44, 0.0  ;;  %v1395_v20 = vpack.c.bf16 %v774_v19, %v773_v18  ;;  %v1127_v44 = vld [vmem:[%s2369_s6] ss:$0 sm:$0xff] }
 0x1f9   : > { %v445_v21 = vpop.permute.xlu1 %444  ;;  %v525_v54 = vpop.permute.xlu0 %524 }
 0x1fa   : > { %v447_v30 = vsel %vm442_vm2, %v445_v21, 0.0  ;;  %v527_v56 = vsel %vm522_vm11, %v525_v54, 0.0  ;;  %v775_v21 = vld [vmem:[#allocation10 + $0x30] sm:$0xff]  ;;  %v877_v54 = vld [vmem:[#allocation11 + $0x18] sm:$0xff] }
 0x1fb   : > { %v448_v34 = vadd.f32 %v447_v30, %v437_v32  ;;  %v780_v32 = vld [vmem:[#allocation10 + $0x58] sm:$0xff] }
 0x1fe   : > { %v455_v23 = vpop.permute.xlu1 %454  ;;  %v555_v63 = vpop.permute.xlu0 %554 }
 0x1ff   : > { %v457_v33 = vsel %vm452_vm4, %v455_v23, 0.0  ;;  %v557_v1 = vsel %vm552_vm14, %v555_v63, 0.0  ;;  %v1398_v23 = vpack.c.bf16 %v776_v22, %v775_v21 }
 0x200   : > { %v458_v37 = vadd.f32 %v457_v33, %v448_v34  ;;  %v781_v34 = vld [vmem:[#allocation10 + $0x60] sm:$0xff] }
 0x203   : > { %v465_v28 = vpop.permute.xlu1 %464  ;;  %v585_v8 = vpop.permute.xlu0 %584 }
 0x204   : > { %v467_v35 = vsel %vm462_vm5, %v465_v28, 0.0  ;;  %v1401_v28 = vpack.c.bf16 %v778_v25, %v777_v24 }
 0x205   : > { %v468_v40 = vadd.f32 %v467_v35, %v458_v37  ;;  %v782_v35 = vld [vmem:[#allocation10 + $0x68] sm:$0xff]  ;;  %v783_v37 = vld [vmem:[#allocation10 + $0x70] sm:$0xff] }
 0x206   : > { %v1407_v36 = vpack.c.bf16 %v782_v35, %v781_v34 }
 0x208   : > { %v475_v31 = vpop.permute.xlu1 %474 }
 0x209   : > { %v477_v39 = vsel %vm472_vm6, %v475_v31, 0.0  ;;  %v779_v31 = vld [vmem:[#allocation10 + $0x50] sm:$0xff] }
 0x20a   : > { %v478_v42 = vadd.f32 %v477_v39, %v468_v40  ;;  %v1404_v33 = vpack.c.bf16 %v780_v32, %v779_v31 }
 0x20d   : > { %v485_v38 = vpop.permute.xlu1 %484 }
 0x20e   : > { %v487_v41 = vsel %vm482_vm7, %v485_v38, 0.0  ;;  %v784_v38 = vld [vmem:[#allocation10 + $0x78] sm:$0xff] }
 0x20f   : > { %v488_v45 = vadd.f32 %v487_v41, %v478_v42  ;;  %v1410_v39 = vpack.c.bf16 %v784_v38, %v783_v37 }
 0x211   : > { %v498_v47 = vadd.f32 %v497_v46, %v488_v45 }
 0x212   : > { %v505_v43 = vpop.permute.xlu1 %504 }
 0x213   : > { %v507_v50 = vsel %vm502_vm9, %v505_v43, 0.0 }
 0x214   : > { %v508_v52 = vadd.f32 %v507_v50, %v498_v47  ;;  %v874_v50 = vld [vmem:[#allocation11] sm:$0xff] }
 0x217   : > { %v515_v48 = vpop.permute.xlu1 %514 }
 0x218   : > { %v517_v51 = vsel %vm512_vm10, %v515_v48, 0.0 }
 0x219   : > { %v518_v55 = vadd.f32 %v517_v51, %v508_v52  ;;  %v875_v51 = vld [vmem:[#allocation11 + $0x8] sm:$0xff]  ;;  %v876_v52 = vld [vmem:[#allocation11 + $0x10] sm:$0xff] }
 0x21b   : > { %v528_v57 = vadd.f32 %v527_v56, %v518_v55  ;;  %v1416_v55 = vpack.c.bf16 %v877_v54, %v876_v52  ;;  %v878_v56 = vld [vmem:[#allocation11 + $0x20] sm:$0xff] }
 0x21c   : > { %v535_v53 = vpop.permute.xlu1 %534 }
 0x21d   : > { %v537_v59 = vsel %vm532_vm12, %v535_v53, 0.0  ;;  %v1413_v53 = vpack.c.bf16 %v875_v51, %v874_v50 }
 0x21e   : > { %v538_v61 = vadd.f32 %v537_v59, %v528_v57  ;;  %v879_v57 = vld [vmem:[#allocation11 + $0x28] sm:$0xff]  ;;  %v881_v59 = vld [vmem:[#allocation11 + $0x38] sm:$0xff] }
 0x221   : > { %v545_v58 = vpop.permute.xlu1 %544 }
 0x222   : > { %v547_v60 = vsel %vm542_vm13, %v545_v58, 0.0  ;;  %v1419_v58 = vpack.c.bf16 %v879_v57, %v878_v56 }
 0x223   : > { %v548_v0 = vadd.f32 %v547_v60, %v538_v61  ;;  %v882_v61 = vld [vmem:[#allocation11 + $0x40] sm:$0xff] }
 0x225   : > { %v558_v2 = vadd.f32 %v557_v1, %v548_v0 }
 0x226   : > { %v565_v62 = vpop.permute.xlu1 %564 }
 0x227   : > { %v567_v4 = vsel %vm562_vm15, %v565_v62, 0.0  ;;  %v883_v62 = vld [vmem:[#allocation11 + $0x48] sm:$0xff] }
 0x228   : > { %v568_v6 = vadd.f32 %v567_v4, %v558_v2  ;;  %v1425_v63 = vpack.c.bf16 %v883_v62, %v882_v61  ;;  %v884_v4 = vld [vmem:[#allocation11 + $0x50] sm:$0xff] }
 0x22b   : > { %v575_v3 = vpop.permute.xlu1 %574 }
 0x22c   : > { %v577_v5 = vsel %vm572_vm0, %v575_v3, 0.0 }
 0x22d   : > { %v578_v9 = vadd.f32 %v577_v5, %v568_v6  ;;  %v885_v5 = vld [vmem:[#allocation11 + $0x58] sm:$0xff] }
 0x22e   : > { %v1428_v6 = vpack.c.bf16 %v885_v5, %v884_v4 }
 0x230   : > { %v581_v7 = vpop.permute.xlu1 %580 }
 0x231   : > { %vm582_vm2 = vcmp.eq.s32.totalorder %v581_v7, %v2270_v27  ;;  %v886_v7 = vld [vmem:[#allocation11 + $0x60] sm:$0xff] }
 0x232   : > { %v587_v10 = vsel %vm582_vm2, %v585_v8, 0.0  ;;  %v887_v8 = vld [vmem:[#allocation11 + $0x68] sm:$0xff] }
 0x233   : > { %v588_v11 = vadd.f32 %v587_v10, %v578_v9  ;;  %v1431_v9 = vpack.c.bf16 %v887_v8, %v886_v7  ;;  %v888_v10 = vld [vmem:[#allocation11 + $0x70] sm:$0xff] }
 0x235   : > { %1233 = vmatmul.mubr.f32.vlgmr.msra.gmra.mrb[0].mxu0 %v588_v11  ;;  %v889_v11 = vld [vmem:[#allocation11 + $0x78] sm:$0xff] }
 0x236   : > { %1302 = vmatprep.mubr.msk.f32.mxu0 %vm1870_vm1, %v1871_v49  ;;  %1390 = vmatpush3.bf16.msra.mxu0 %v1389_v15  ;;  %v1434_v12 = vpack.c.bf16 %v889_v11, %v888_v10 }
 0x237   : > { %1391 = vmatprep.subr.bf16.mxu0 %v1869_v26 }
 0x23a   : > { %1393 = vmatpush3.bf16.msra.mxu0 %v1392_v17 }
 0x23b   : > { %1394 = vmatprep.subr.bf16.mxu0 %v1869_v26 }
 0x23e   : > { %1396 = vmatpush3.bf16.msra.mxu0 %v1395_v20 }
 0x23f   : > { %1397 = vmatprep.subr.bf16.mxu0 %v1869_v26 }
 0x242   : > { %1399 = vmatpush3.bf16.msra.mxu0 %v1398_v23 }
 0x243   : > { %1400 = vmatprep.subr.bf16.mxu0 %v1869_v26 }
 0x246   : > { %1402 = vmatpush3.bf16.msra.mxu0 %v1401_v28 }
 0x247   : > { %1403 = vmatprep.subr.bf16.mxu0 %v1869_v26 }
 0x24a   : > { %1405 = vmatpush3.bf16.msra.mxu0 %v1404_v33 }
 0x24b   : > { %1406 = vmatprep.subr.bf16.mxu0 %v1869_v26 }
 0x24e   : > { %1408 = vmatpush3.bf16.msra.mxu0 %v1407_v36 }
 0x24f   : > { %1409 = vmatprep.subr.bf16.mxu0 %v1869_v26 }
 0x252   : > { %1411 = vmatpush3.bf16.msra.mxu0 %v1410_v39 }
 0x308   : > { %v671_v29 = vpop.f32.mrb[0].mxu0 }
 0x309   : > { %v1234_v30 = vpop.f32.mrb[1].mxu0  ;;  %1268 = vmatmul.mubr.f32.vlgmr.msra.gmra.mrb[0].mxu1 %v671_v29 }
 0x30a   : > { %1337 = vmatprep.mubr.msk.f32.mxu1 %vm1870_vm1, %v1871_v49  ;;  %v1126_v49 = vld [vmem:[%s2367_s4] ss:$0 sm:$0xff]  ;;  %vm862_vm1 = vcmp.lt.s32.totalorder %v2270_v27, 8  ;;  %1414 = vmatpush3.bf16.msra.mxu1 %v1413_v53  ;;  %v880_v27 = vld [vmem:[#allocation11 + $0x30] sm:$0xff] }
 0x30b   : > { %1415 = vmatprep.subr.bf16.mxu1 %v1869_v26  ;;  %v1422_v60 = vpack.c.bf16 %v881_v59, %v880_v27 }
 0x30e   : > { %1417 = vmatpush3.bf16.msra.mxu1 %v1416_v55 }
 0x30f   : > { %1418 = vmatprep.subr.bf16.mxu1 %v1869_v26 }
 0x312   : > { %1420 = vmatpush3.bf16.msra.mxu1 %v1419_v58 }
 0x313   : > { %1421 = vmatprep.subr.bf16.mxu1 %v1869_v26 }
 0x316   : > { %1423 = vmatpush3.bf16.msra.mxu1 %v1422_v60 }
 0x317   : > { %1424 = vmatprep.subr.bf16.mxu1 %v1869_v26 }
 0x31a   : > { %1426 = vmatpush3.bf16.msra.mxu1 %v1425_v63 }
 0x31b   : > { %1427 = vmatprep.subr.bf16.mxu1 %v1869_v26 }
 0x31e   : > { %1429 = vmatpush3.bf16.msra.mxu1 %v1428_v6 }
 0x31f   : > { %1430 = vmatprep.subr.bf16.mxu1 %v1869_v26 }
 0x322   : > { %1432 = vmatpush3.bf16.msra.mxu1 %v1431_v9 }
 0x323   : > { %1433 = vmatprep.subr.bf16.mxu1 %v1869_v26 }
 0x326   : > { %1435 = vmatpush3.bf16.msra.mxu1 %v1434_v12 }
 0x3dc   : > { %v764_v40 = vpop.f32.mrb[0].mxu1 }
 0x3dd   : > { %v765_v41 = vadd.f32 %v1126_v49, %v764_v40  ;;  %v1269_v42 = vpop.f32.mrb[1].mxu1 }
 0x3df   : > { %1583 = vtanh.f32 %v765_v41 }
 0x3e9   : > { %v1584_v43 = vpop.eup %1583 }
 0x3ea   : > { %1303 = vmatmul.mubr.f32.vlgmr.msra.gmra.mrb[2].mxu0 %v1584_v43 }
 0x4bd   : > { %v858_v45 = vpop.f32.mrb[2].mxu0 }
 0x4be   : > { %v859_v46 = vadd.f32 %v1127_v44, %v858_v45  ;;  %v1304_v47 = vpop.f32.mrb[3].mxu0 }
 0x4c0   : > { %v863_v48 = vsel %vm862_vm1, %v859_v46, -1e+30 }
 0x4c1   : > { %864 = vmax.xlane.f32.xlu1 %v863_v48 }
 0x54e   : > { %v865_v0 = vpop.xlane.xlu1 %864 }
 0x54f   : > { %v866_v1 = vsub.f32 %v863_v48, %v865_v0 }
 0x551   : > { %v867_v2 = vmul.f32 1.442695, %v866_v1 }
 0x553   : > { %1585 = vpow2.f32 %v867_v2 }
 0x55d   : > { %v1586_v3 = vpop.eup %1585 }
 0x55e   : > { %869 = vadd.xlane.f32.xlu0 %v1586_v3 }
 0x5eb   : > { %v870_v13 = vpop.xlane.xlu0 %869 }
 0x5ec   : > { %1587 = vrcp.f32 %v870_v13 }
 0x5f6   : > { %v1588_v14 = vpop.eup %1587 }
 0x5f7   : > { %v873_v15 = vmul.f32 %v1588_v14, %v1586_v3 }
 0x5f9   : > { %1338 = vmatmul.mubr.f32.vlgmr.msra.gmra.mrb[2].mxu1 %v873_v15 }
 0x6cc   : > { %v956_v16 = vpop.f32.mrb[2].mxu1 }
 0x6cd   : > { %v960_v17 = vadd.f32 %v956_v16, %v859_v46  ;;  %v1339_v18 = vpop.f32.mrb[3].mxu1 }
 0x6cf   : > { %961 = vst [vmem:[%s415_s20] sm:$0xff] %v960_v17 }
 0x6d0   : > { %1774 = shalt.err (!%p1771_p6)
}
 0x6d1   : > { %s1775_s17 = scalar_lea.hbm %s2319_s10, 128  ;;  %s1779_s14 = scalar_lea.hbm %s2371_s8, 256 }
 0x6d2   : > { %p1776_p11 = scmp.ne.s32.totalorder %s2319_s10, %s1775_s17  ;;  %p1780_p12 = scmp.lt.u32.totalorder %s2319_s10, %s2371_s8 }
 0x6d3   : > { %p1781_p3 = scmp.lt.u32.totalorder %s1779_s14, %s1775_s17  ;;  %p1783_p0 = scmp.lt.u32.totalorder %s1775_s17, %s2319_s10 }
 0x6d4   : > { %p1777_p1 = pnand %p1776_p11, %p2402_p2 }
 0x6d5   : > { %p1782_p13 = por %p1781_p3, %p1780_p12 }
 0x6d6   : > { %p1778_p9 = pneg %p1777_p1 }
 0x6d7   : > { %p1784_p4 = por %p1783_p0, %p1782_p13 }
 0x6d9   : > { %p1785_p10 = pnand %p1784_p4, %p1778_p9 }
 0x6db   : > { %1788 = shalt.err (!%p1785_p10)
}
 0x6dc   : > { %1456 = dma.vmem_to_hbm [thread:$0]  (%p2402_p2), %s2321_s21, 128, %s2319_s10, %s963_s15  }
 0x6dd PF: > { %s988_s22 = sand.u32 1, %s1831_s27   ;;  %p2403_p5 = scmp.ne.s32.totalorder %s2392_s24, 0 }
 0x6de   : > { %p2404_p7 = scmp.ge.s32.totalorder %s1843_s30, 2  ;;  %s989_s13 = scalar_lea.sflag [#allocation4], %s988_s22 }
 0x6e0   : > { %p1479_p8 = pnand %p2404_p7, %p2403_p5 }
 0x6e2   : > { %1826 = dma.done.wait (!%p1479_p8), %s989_s13, 128  }
 0x6e3   : > { %1828 = vsyncadd (!%p1479_p8), %s989_s13, 4294967168  ;;  %s2405_s26 = sld [smem:[#allocation20_spill]]  ;;  %p26_p6 = scmp.ge.s32.totalorder %s2070_s23, 4  }
 0x6e4   : > { %s2406_s27 = smov %s1835_s28  ;;  %s2407_s28 = smov %s1839_s29 }
 0x6e5   : > { %s2409_s30 = smov %s2070_s23  ;;  %28 = sbr.rel (!%p26_p6) target bundleno = 14 (0xe), region = 126 }
 0x6e9   : > { %s2408_s29 = smov %s2405_s26 }
 0x6ec   :  { %994 = vsyncpa [#allocation3], 1 }
 0x6ed   :  { %996 = vsyncpa [#allocation3 + $0x1], 1 }
 0x6ee   :  { %997 = vsyncpa [#allocation6], 1 }
 0x6ef   :  { %999 = vsyncpa [#allocation6 + $0x1], 1 }
 0x6f0   :  { %1000 = vsyncpa [#allocation9], 1 }
 0x6f1   :  { %1001 = vsyncpa [#allocation12], 1 }
 0x6f2   :  { %1002 = vsyncpa [#allocation4], 1 }
 0x6f3   :  { %1004 = vsyncpa [#allocation4 + $0x1], 1 }

</bundles_post_ra>
